<compile_context>
chip_gen: v7x
topology: tpu7x:2x2x1
jax: 0.10.0
libtpu: 0.0.40
codegen_flags: <defaults>
</compile_context>

<pallas_src>
import jax
import jax.numpy as jnp
from jax import lax
from jax.experimental import pallas as pl
from jax.experimental.pallas import tpu as pltpu

INDIM = 32     # stand-in for BERT hidden size (768 in the real model)
OUTDIM = 128   # projection output dim
VOCAB = 64     # synthetic vocab
EPS = 1e-6     # nn.LayerNorm(outdim, eps=1e-06)


def _round_up(x, m):
    return (x + m - 1) // m * m


def fused_emb_conv_ln_kernel(ids_ref, mask_ref, tbl_ref, w_ref, bgb_ref, o_ref):
    """One row tile: gather(ids)*mask -> Conv1D(k=1) -> LayerNorm.

    ids_ref : (tile_m, 1)      int32   token ids
    mask_ref: (tile_m, 1)      float32 attention mask
    tbl_ref : (VOCAB, INDIM)   bf16    word-embedding table (grid-resident)
    w_ref   : (INDIM, OUTDIM)  bf16    pre-centered Conv1D weight
    bgb_ref : (3, OUTDIM)      float32 rows = [bias_centered, ln_gamma, ln_beta]
    o_ref   : (tile_m, OUTDIM) float32
    """
    tile_m = ids_ref.shape[0]
    vocab = tbl_ref.shape[0]

    # Synthetic embedding gather as a one-hot matmul on the MXU (small vocab only).
    ids = ids_ref[...]                                                   # (tile_m, 1) i32
    onehot = (ids == lax.broadcasted_iota(jnp.int32, (tile_m, vocab), 1))
    emb = jnp.dot(onehot.astype(tbl_ref.dtype), tbl_ref[...],
                  preferred_element_type=jnp.float32)                    # (tile_m, INDIM) f32
    emb = emb * mask_ref[...]                                            # attention mask

    # Conv1D(kernel_size=1) == pointwise linear; bf16 operands, f32 accumulation.
    bgb = bgb_ref[...]
    y_c = jnp.dot(emb.astype(w_ref.dtype), w_ref[...],
                  preferred_element_type=jnp.float32)
    y_c = y_c + bgb[0:1, :]   # already mean-free: W/b pre-centered in the wrapper

    # LayerNorm(eps=1e-6) with the mean-reduction algebraically removed.
    var = jnp.mean(y_c * y_c, axis=-1, keepdims=True)
    out = y_c * lax.rsqrt(var + EPS) * bgb[1:2, :] + bgb[2:3, :]
    o_ref[...] = out.astype(o_ref.dtype)


def bert_embedding2_forward(bert_ids, tmask, params, *, tile_m=1024):
    """bert_ids, tmask: (B, S) -> (B, S, OUTDIM). Fully fused Pallas forward."""
    B, S = bert_ids.shape
    rows = B * S

    tbl = params["word_emb"].astype(jnp.bfloat16)            # (VOCAB, INDIM)
    vocab, D = tbl.shape
    w = params["conv_w"]                                     # (INDIM, OUTDIM) f32
    Dout = w.shape[1]

    # Pre-center the projection so the kernel can skip LayerNorm's mean:
    #   mean_j(x @ W + b) = x @ mean_j(W_rows) + mean(b)  (exact identity).
    w_c = (w - jnp.mean(w, axis=1, keepdims=True)).astype(jnp.bfloat16)
    b_c = params["conv_b"] - jnp.mean(params["conv_b"])
    bgb = jnp.stack([b_c, params["ln_gamma"], params["ln_beta"]]).astype(jnp.float32)

    # Row tiling: tile_m is a multiple of 8 (f32 sublanes); pad rows so the last
    # tile is full (previous version silently assumed rows % tile_m == 0).
    tile_m = max(8, min(tile_m, _round_up(rows, 8)))
    tile_m = _round_up(tile_m, 8)
    rows_p = _round_up(rows, tile_m)
    grid = (rows_p // tile_m,)

    ids = jnp.zeros((rows_p, 1), jnp.int32).at[:rows, 0].set(bert_ids.reshape(rows))
    mask = jnp.zeros((rows_p, 1), jnp.float32).at[:rows, 0].set(
        tmask.reshape(rows).astype(jnp.float32))

    # Per-step VMEM (double-buffered inputs/outputs + resident tables); raise the
    # scoped limit modestly if large tiles need it (stays below every gen's
    # physical VMEM, incl. v7x's 64 MiB).
    est = 2 * (tile_m * 4 + tile_m * 4 + tile_m * Dout * 4
               + vocab * D * 2 + D * Dout * 2 + 3 * Dout * 4)
    vmem_limit = int(min(max(2 * est, 32 * 1024 * 1024), 64 * 1024 * 1024))

    out = pl.pallas_call(
        fused_emb_conv_ln_kernel,
        out_shape=jax.ShapeDtypeStruct((rows_p, Dout), jnp.float32),
        grid_spec=pltpu.PrefetchScalarGridSpec(
            num_scalar_prefetch=0,
            grid=grid,
            in_specs=[
                pl.BlockSpec((tile_m, 1), lambda i: (i, 0)),   # token ids
                pl.BlockSpec((tile_m, 1), lambda i: (i, 0)),   # attention mask
                pl.BlockSpec((vocab, D), lambda i: (0, 0)),    # embedding table (resident)
                pl.BlockSpec((D, Dout), lambda i: (0, 0)),     # conv weight (resident)
                pl.BlockSpec((3, Dout), lambda i: (0, 0)),     # [b_c, gamma, beta]
            ],
            out_specs=pl.BlockSpec((tile_m, Dout), lambda i: (i, 0)),
        ),
        compiler_params=pltpu.CompilerParams(
            dimension_semantics=("parallel",),
            vmem_limit_bytes=vmem_limit,
        ),
    )(ids, mask, tbl, w_c, bgb)

    return out[:rows].reshape(B, S, Dout)


def init_params(key):
    k_emb, k_w, k_b = jax.random.split(key, 3)
    return {
        "word_emb": jax.random.normal(k_emb, (VOCAB, INDIM), jnp.float32) * 0.02,
        "conv_w": jax.random.normal(k_w, (INDIM, OUTDIM), jnp.float32)
                  * (1.0 / jnp.sqrt(INDIM)),
        "conv_b": jax.random.normal(k_b, (OUTDIM,), jnp.float32) * 0.01,
        "ln_gamma": jnp.ones((OUTDIM,), jnp.float32),   # nn.LayerNorm default
        "ln_beta": jnp.zeros((OUTDIM,), jnp.float32),   # nn.LayerNorm default
    }


if __name__ == "__main__":
    key = jax.random.PRNGKey(0)
    k_params, k_ids = jax.random.split(key)

    B, S = 2, 8
    params = init_params(k_params)
    bert_ids = jax.random.randint(k_ids, (B, S), 0, VOCAB, dtype=jnp.int32)
    tmask = jnp.ones((B, S), dtype=jnp.int32)

    out = bert_embedding2_forward(bert_ids, tmask, params)
    jax.block_until_ready(out)
    assert out.shape == (B, S, OUTDIM), out.shape

    # Pure-JAX f32 reference; loose tolerance accounts for the bf16 MXU operands.
    emb_ref = jnp.take(params["word_emb"], bert_ids, axis=0)
    emb_ref = emb_ref * tmask[..., None].astype(jnp.float32)
    y_ref = emb_ref @ params["conv_w"] + params["conv_b"]
    mu = y_ref.mean(-1, keepdims=True)
    var = ((y_ref - mu) ** 2).mean(-1, keepdims=True)
    ref = (y_ref - mu) * lax.rsqrt(var + EPS) * params["ln_gamma"] + params["ln_beta"]
    max_err = float(jnp.max(jnp.abs(out - ref)))
    assert max_err < 0.15, max_err
    assert bool(jnp.all(jnp.isfinite(out)))
    print("KERNEL_OK")
</pallas_src>

<mosaic_0001>
module attributes {stable_mosaic.version = 11 : i64} {
  func.func @fused_emb_conv_ln_kernel(%arg0: i32, %arg1: memref<16x1xi32, #tpu.memory_space<vmem>>, %arg2: memref<16x1xf32, #tpu.memory_space<vmem>>, %arg3: memref<64x32xbf16, #tpu.memory_space<vmem>>, %arg4: memref<32x128xbf16, #tpu.memory_space<vmem>>, %arg5: memref<3x128xf32, #tpu.memory_space<vmem>>, %arg6: memref<16x128xf32, #tpu.memory_space<vmem>>) attributes {dimension_semantics = [#tpu.dimension_semantics<parallel>], iteration_bounds = array<i64: 1>, scalar_prefetch = 0 : i64, scratch_operands = 0 : i64, tpu.core_type = #tpu.core_type<tc>, window_params = [{transform_indices = @transform_0, window_bounds = array<i64: 16, 1>}, {transform_indices = @transform_1, window_bounds = array<i64: 16, 1>}, {pipeline_mode = #tpu.pipeline_mode<synchronous>, transform_indices = @transform_2, window_bounds = array<i64: 64, 32>}, {pipeline_mode = #tpu.pipeline_mode<synchronous>, transform_indices = @transform_3, window_bounds = array<i64: 32, 128>}, {pipeline_mode = #tpu.pipeline_mode<synchronous>, transform_indices = @transform_4, window_bounds = array<i64: 3, 128>}, {transform_indices = @transform_5, window_bounds = array<i64: 16, 128>}]} {
    %c0 = arith.constant 0 : index
    %c0_0 = arith.constant 0 : index
    %0 = vector.load %arg1[%c0, %c0_0] : memref<16x1xi32, #tpu.memory_space<vmem>>, vector<16x1xi32>
    %1 = tpu.iota {dimensions = array<i32: 1>} : vector<16x64xi32>
    %2 = vector.broadcast %0 : vector<16x1xi32> to vector<16x64xi32>
    %3 = arith.cmpi eq, %2, %1 : vector<16x64xi32>
    %4 = arith.extui %3 : vector<16x64xi1> to vector<16x64xi32>
    %5 = arith.sitofp %4 : vector<16x64xi32> to vector<16x64xf32>
    %6 = arith.truncf %5 : vector<16x64xf32> to vector<16x64xbf16>
    %c0_1 = arith.constant 0 : index
    %c0_2 = arith.constant 0 : index
    %7 = vector.load %arg3[%c0_1, %c0_2] : memref<64x32xbf16, #tpu.memory_space<vmem>>, vector<64x32xbf16>
    %cst = arith.constant dense<0.000000e+00> : vector<16x32xf32>
    %8 = tpu.matmul %6, %7, %cst {dimension_numbers = #tpu.dot_dimension_numbers<[1], [0], [0], [1], [0, 0, 1, 1], [], []>} : vector<16x64xbf16>, vector<64x32xbf16>, vector<16x32xf32> -> vector<16x32xf32>
    %c0_3 = arith.constant 0 : index
    %c0_4 = arith.constant 0 : index
    %9 = vector.load %arg2[%c0_3, %c0_4] : memref<16x1xf32, #tpu.memory_space<vmem>>, vector<16x1xf32>
    %10 = vector.broadcast %9 : vector<16x1xf32> to vector<16x32xf32>
    %11 = arith.mulf %8, %10 : vector<16x32xf32>
    %c0_5 = arith.constant 0 : index
    %c0_6 = arith.constant 0 : index
    %12 = vector.load %arg5[%c0_5, %c0_6] : memref<3x128xf32, #tpu.memory_space<vmem>>, vector<3x128xf32>
    %13 = arith.truncf %11 : vector<16x32xf32> to vector<16x32xbf16>
    %c0_7 = arith.constant 0 : index
    %c0_8 = arith.constant 0 : index
    %14 = vector.load %arg4[%c0_7, %c0_8] : memref<32x128xbf16, #tpu.memory_space<vmem>>, vector<32x128xbf16>
    %cst_9 = arith.constant dense<0.000000e+00> : vector<16x128xf32>
    %15 = tpu.matmul %13, %14, %cst_9 {dimension_numbers = #tpu.dot_dimension_numbers<[1], [0], [0], [1], [0, 0, 1, 1], [], []>} : vector<16x32xbf16>, vector<32x128xbf16>, vector<16x128xf32> -> vector<16x128xf32>
    %16 = vector.extract_strided_slice %12 {offsets = [0, 0], sizes = [1, 128], strides = [1, 1]} : vector<3x128xf32> to vector<1x128xf32>
    %17 = vector.broadcast %16 : vector<1x128xf32> to vector<16x128xf32>
    %18 = arith.addf %15, %17 : vector<16x128xf32>
    %19 = arith.mulf %18, %18 : vector<16x128xf32>
    %cst_10 = arith.constant dense<0.000000e+00> : vector<16xf32>
    %20 = vector.multi_reduction <add>, %19, %cst_10 [1] : vector<16x128xf32> to vector<16xf32>
    %21 = vector.shape_cast %20 : vector<16xf32> to vector<16x1xf32>
    %cst_11 = arith.constant 1.280000e+02 : f32
    %22 = vector.broadcast %cst_11 : f32 to vector<16x1xf32>
    %23 = arith.divf %21, %22 : vector<16x1xf32>
    %cst_12 = arith.constant 9.99999997E-7 : f32
    %24 = vector.broadcast %cst_12 : f32 to vector<16x1xf32>
    %25 = arith.addf %23, %24 : vector<16x1xf32>
    %26 = math.rsqrt %25 : vector<16x1xf32>
    %27 = vector.broadcast %26 : vector<16x1xf32> to vector<16x128xf32>
    %28 = arith.mulf %18, %27 : vector<16x128xf32>
    %29 = vector.extract_strided_slice %12 {offsets = [1, 0], sizes = [1, 128], strides = [1, 1]} : vector<3x128xf32> to vector<1x128xf32>
    %30 = vector.broadcast %29 : vector<1x128xf32> to vector<16x128xf32>
    %31 = arith.mulf %28, %30 : vector<16x128xf32>
    %32 = vector.extract_strided_slice %12 {offsets = [2, 0], sizes = [1, 128], strides = [1, 1]} : vector<3x128xf32> to vector<1x128xf32>
    %33 = vector.broadcast %32 : vector<1x128xf32> to vector<16x128xf32>
    %34 = arith.addf %31, %33 : vector<16x128xf32>
    %c0_13 = arith.constant 0 : index
    %c0_14 = arith.constant 0 : index
    %35 = vector.load %arg6[%c0_13, %c0_14] : memref<16x128xf32, #tpu.memory_space<vmem>>, vector<16x128xf32>
    tpu.vector_store %arg6[%c0_13, %c0_14], %34 {strides = array<i32>} : memref<16x128xf32, #tpu.memory_space<vmem>>, vector<16x128xf32>,
    return
  }
  func.func @transform_0(%arg0: i32) -> (i32, i32) {
    %c0_i32 = arith.constant 0 : i32
    %c0_i32_0 = arith.constant 0 : i32
    return %arg0, %c0_i32 : i32, i32
  }
  func.func @transform_1(%arg0: i32) -> (i32, i32) {
    %c0_i32 = arith.constant 0 : i32
    %c0_i32_0 = arith.constant 0 : i32
    return %arg0, %c0_i32 : i32, i32
  }
  func.func @transform_2(%arg0: i32) -> (i32, i32) {
    %c0_i32 = arith.constant 0 : i32
    %c0_i32_0 = arith.constant 0 : i32
    %c0_i32_1 = arith.constant 0 : i32
    return %c0_i32, %c0_i32_0 : i32, i32
  }
  func.func @transform_3(%arg0: i32) -> (i32, i32) {
    %c0_i32 = arith.constant 0 : i32
    %c0_i32_0 = arith.constant 0 : i32
    %c0_i32_1 = arith.constant 0 : i32
    return %c0_i32, %c0_i32_0 : i32, i32
  }
  func.func @transform_4(%arg0: i32) -> (i32, i32) {
    %c0_i32 = arith.constant 0 : i32
    %c0_i32_0 = arith.constant 0 : i32
    %c0_i32_1 = arith.constant 0 : i32
    return %c0_i32, %c0_i32_0 : i32, i32
  }
  func.func @transform_5(%arg0: i32) -> (i32, i32) {
    %c0_i32 = arith.constant 0 : i32
    %c0_i32_0 = arith.constant 0 : i32
    return %arg0, %c0_i32 : i32, i32
  }
}

</mosaic_0001>

<bundles_post_ra>
// kernel: tpu_custom_call.1
= control target key start
LH: loop header
LB: loop body
LE: loop exit
PB: predicated region body
PF: predicated region fallthrough
CT: control target
= control target key end

     0   :  { %v322_v1 = vmov 0   ;;  %v323_v2 = vmov 0.0   ;;  %s403_s0 = inlined_call_operand.vmem [shape: s32[16,1], index: 0, kind: input, shape index: {}]   ;;  %s404_s1 = inlined_call_operand.vmem [shape: f32[16,1], index: 1, kind: input, shape index: {}]   ;;  %s405_s2 = inlined_call_operand.vmem [shape: bf16[64,32], index: 2, kind: input, shape index: {}]   ;;  %s406_s3 = inlined_call_operand.vmem [shape: bf16[32,128], index: 3, kind: input, shape index: {}]   ;;  %s407_s4 = inlined_call_operand.vmem [shape: f32[3,128], index: 4, kind: input, shape index: {}]   ;;  %s408_s5 = inlined_call_operand.hbm [shape: f32[16,128], index: 5, kind: output, shape index: {}]  }
   0x1   :  { %v22_v0 = vld [vmem:[%s403_s0] sm:$0xff]  ;;  %286 = vset.pattern.permute.xlu0 %v322_v1  ;;  %260 = vmatprep.subr.bf16.mxu0 %v323_v2  ;;  %v23_v4 = vld [vmem:[%s403_s0 + $0x8] sm:$0xff] }
   0x2   :  { %v288_v3 = vld [vmem:[%s405_s2] sm:$0xff]   ;;  %27 = vperm.xlu0 %286, %v22_v0   ;;  %v289_v5 = vld [vmem:[%s405_s2 + $0x8] sm:$0xff]   ;;  %287 = vset.pattern.permute.xlu1 %v322_v1 }
   0x3   :  { %261 = vmatpush3.bf16.msra.mxu0 %v288_v3  ;;  %272 = vmatprep.subr.bf16.mxu1 %v323_v2 }
   0x4   :  { %262 = vmatprep.subr.bf16.mxu0 %v323_v2 }
   0x6   :  { %30 = vperm.xlu0 %286, %v23_v4  }
   0x7   :  { %10 = vsyncpa [#allocation3], 0  ;;  %263 = vmatpush3.bf16.msra.mxu0 %v289_v5  ;;  %v290_v6 = vld [vmem:[%s405_s2 + $0x10] sm:$0xff]   ;;  %vm324_vm0 = vmmov 0   ;;  %v116_v7 = vld [vmem:[%s404_s1] sm:$0xff]  ;;  %v24_v10 = vlaneseq  ;;  %vm71_vm3 = vcmask 523264  }
   0x8   :  { %264 = vmatprep.subr.bf16.mxu0 %v323_v2  ;;  %268 = vmatprep.mubr.msk.bf16.mxu0 %vm324_vm0, %v323_v2  ;;  %v291_v8 = vld [vmem:[%s405_s2 + $0x18] sm:$0xff]   ;;  %v117_v9 = vld [vmem:[%s404_s1 + $0x8] sm:$0xff]  ;;  %v292_v17 = vld [vmem:[%s406_s3] sm:$0xff]   ;;  %vm152_vm4 = vcmask 261120  }
   0x9   :  { %276 = vmatprep.mubr.msk.bf16.mxu1 %vm324_vm0, %v323_v2  ;;  %120 = vperm.xlu1 %287, %v116_v7   ;;  %v25_v11 = vand.u32 127, %v24_v10  ;;  %v293_v18 = vld [vmem:[%s406_s3 + $0x8] sm:$0xff]   ;;  %v137_v28 = vshrl.u32 %v24_v10, 7  ;;  %v130_v30 = vld [vmem:[%s407_s4] sm:$0x7]  ;;  %s325_s3 = smov [#allocation2]  }
   0xa   :  { %273 = vmatpush3.bf16.msra.mxu1 %v292_v17  ;;  %s231_s4 = sshll.u32 %s325_s3, 4  ;;  %s232_s4 = int_to_ptr.vmem [resolvable:$true] %s231_s4 }
   0xb   :  { %265 = vmatpush3.bf16.msra.mxu0 %v290_v6  ;;  %274 = vmatprep.subr.bf16.mxu1 %v323_v2  ;;  %v138_v29 = vsub.s32 0, %v137_v28  ;;  %v214_v46 = vsub.s32 1, %v137_v28  ;;  %v220_v47 = vsub.s32 2, %v137_v28  ;;  %s298_s12 = scalar_lea.vmem %s232_s4, 256  ;;  %p303_p1 = scmp.lt.s32.totalorder %s232_s4, %s232_s4 }
   0xc   :  { %266 = vmatprep.subr.bf16.mxu0 %v323_v2  ;;  %p299_p0 = scmp.ne.s32.totalorder %s232_s4, %s298_s12  ;;  %p304_p2 = scmp.lt.s32.totalorder %s298_s12, %s298_s12 }
   0xd   :  { %125 = vperm.xlu1 %287, %v117_v9   ;;  %v139_v31 = vrot.slane %v130_v30, %v138_v29  ;;  %v215_v48 = vrot.slane %v130_v30, %v214_v46  ;;  %v221_v50 = vrot.slane %v130_v30, %v220_v47 }
   0xe   :  { %275 = vmatpush3.bf16.msra.mxu1 %v293_v18  ;;  %p305_p3 = por %p304_p2, %p303_p1 }
   0xf   :  { %267 = vmatpush3.bf16.msra.mxu0 %v291_v8 }
  0x10   :  { %p306_p4 = pnand %p305_p3, %p299_p0 }
  0x81   :  { %v28_v12 = vpop.permute.xlu0 %27 }
  0x82   :  { %vm32_vm1 = vcmp.eq.s32.totalorder %v28_v12, %v25_v11 }
  0x83   :  { %v242_v14 = vsel %vm32_vm1, 1.0, %v323_v2 }
  0x85   :  { %v31_v13 = vpop.permute.xlu0 %30 }
  0x86   :  { %vm33_vm2 = vcmp.eq.s32.totalorder %v31_v13, %v25_v11 }
  0x87   :  { %v243_v15 = vsel %vm33_vm2, 1.0, %v323_v2 }
  0x88   :  { %v38_v16 = vpack.c.bf16 %v243_v15, %v242_v14  ;;  %v121_v19 = vpop.permute.xlu1 %120 }
  0x8a   :  { %269 = vmatmul.mubr.msk.bf16.vlgmr.msra.gmra.mrb[0].mxu0 %vm71_vm3, %v38_v16 }
  0x8c   :  { %v126_v22 = vpop.permute.xlu1 %125 }
 0x15d   :  { %v109_v20 = vpop.f32.mrb[0].mxu0 }
 0x15e   :  { %v270_v21 = vpop.f32.mrb[1].mxu0  ;;  %v128_v24 = vmul.f32 %v121_v19, %v109_v20 }
 0x15f   :  { %v112_v23 = vpop.f32.mrb[2].mxu0 }
 0x160   :  { %v129_v25 = vmul.f32 %v126_v22, %v112_v23  ;;  %v271_v26 = vpop.f32.mrb[3].mxu0 }
 0x162   :  { %v131_v27 = vpack.c.bf16 %v129_v25, %v128_v24 }
 0x164   :  { %277 = vmatmul.mubr.msk.bf16.vlgmr.msra.gmra.mrb[0].mxu1 %vm152_vm4, %v131_v27 }
 0x237   :  { %v190_v32 = vpop.f32.mrb[0].mxu1 }
 0x238   :  { %v191_v33 = vadd.f32 %v190_v32, %v139_v31  ;;  %v278_v34 = vpop.f32.mrb[1].mxu1 }
 0x239   :  { %v193_v35 = vpop.f32.mrb[2].mxu1 }
 0x23a   :  { %v194_v36 = vadd.f32 %v193_v35, %v139_v31  ;;  %v279_v37 = vpop.f32.mrb[3].mxu1  ;;  %v197_v38 = vmul.f32 %v191_v33, %v191_v33 }
 0x23c   :  { %199 = vadd.xlane.f32.xlu0 %v197_v38  ;;  %v198_v39 = vmul.f32 %v194_v36, %v194_v36 }
 0x23e   :  { %201 = vadd.xlane.f32.xlu1 %v198_v39 }
 0x2c9   :  { %v200_v40 = vpop.xlane.xlu0 %199 }
 0x2ca   :  { %v204_v41 = vmul.f32 0.0078125, %v200_v40 }
 0x2cb   :  { %v202_v42 = vpop.xlane.xlu1 %201 }
 0x2cc   :  { %v206_v43 = vadd.f32 1e-06, %v204_v41  ;;  %v205_v44 = vmul.f32 0.0078125, %v202_v42 }
 0x2ce   :  { %294 = vrsqrt.f32 %v206_v43  ;;  %v207_v45 = vadd.f32 1e-06, %v205_v44 }
 0x2d0   :  { %296 = vrsqrt.f32 %v207_v45 }
 0x2d8   :  { %v295_v49 = vpop.eup %294 }
 0x2d9   :  { %v210_v51 = vmul.f32 %v295_v49, %v191_v33 }
 0x2da   :  { %v297_v52 = vpop.eup %296 }
 0x2db   :  { %v211_v53 = vmul.f32 %v297_v52, %v194_v36  ;;  %v216_v54 = vmul.f32 %v215_v48, %v210_v51 }
 0x2dd   :  { %v217_v55 = vmul.f32 %v215_v48, %v211_v53  ;;  %v222_v56 = vadd.f32 %v221_v50, %v216_v54 }
 0x2df   :  { %v223_v57 = vadd.f32 %v221_v50, %v217_v55  ;;  %224 = vst [vmem:[#allocation2] sm:$0xff] %v222_v56 }
 0x2e1   :  { %225 = vst [vmem:[#allocation2 + $0x8] sm:$0xff] %v223_v57 }
 0x2e2   :  { %309 = shalt.err (!%p306_p4)
}
 0x2e3   :  { %s310_s15 = scalar_lea.hbm %s408_s5, 256 }
 0x2e4   :  { %p311_p5 = scmp.ne.s32.totalorder %s408_s5, %s310_s15  ;;  %p314_p6 = scmp.lt.u32.totalorder %s310_s15, %s408_s5 }
 0x2e6   :  { %p316_p7 = pnand %p314_p6, %p311_p5 }
 0x2e8   :  { %319 = shalt.err (!%p316_p7)
}
 0x2e9   :  { %s326_s20 = smov 128   ;;  %s327_s21 = smov 8  }
 0x2ea   :  { %237 = dma.vmem_to_hbm [thread:$0]  %s232_s4, 256, %s408_s5, [#allocation3], %s326_s20, %s326_s20, %s327_s21  }
 0x2eb   :  { %320 = dma.done.wait [#allocation3], 256  }
 0x2ec   :  { %321 = vsyncadd [#allocation3], 4294967040 }
 0x2ed   :  { %241 = vsyncpa [#allocation3], 1 }

</bundles_post_ra>
